<compile_context>
chip_gen: v7x
topology: tpu7x:2x2x1
jax: 0.10.0
libtpu: 0.0.40
codegen_flags: <defaults>
</compile_context>

<pallas_src>
import functools

import jax
import jax.numpy as jnp
from jax.experimental import pallas as pl
from jax.experimental.pallas import tpu as pltpu


def _sam0_kernel(x_ref, w1_ref, b1_ref, w2_ref, shift_ref, o_ref):
    # x block: (1, C, T) -- channels on sublanes, spatial on lanes.
    x = x_ref[0].astype(jnp.float32)                                  # (C, T)

    # origin_conv: 1x1 conv == per-pixel channel mix: x_origin = W1 @ x + b1
    x_origin = jnp.dot(w1_ref[...], x,
                       preferred_element_type=jnp.float32) + b1_ref[...]

    # mask = 1 - sigmoid(x_origin); t = x - x_origin * mask   (sigmoid -> EUP)
    mask = 1.0 - jax.nn.sigmoid(x_origin)
    t = x - x_origin * mask

    # out_conv: 1x1 conv with bias + eval-mode BatchNorm folded into (W2',
    # shift'), then ReLU.
    y = jnp.dot(w2_ref[...], t,
                preferred_element_type=jnp.float32) + shift_ref[...]
    o_ref[0] = jnp.maximum(y, 0.0).astype(o_ref.dtype)


@functools.partial(jax.jit, static_argnames=("tile_s", "eps"))
def _sam0_impl(x_nchw, w1, b1, w2, b2, gamma, beta, running_mean, running_var,
               *, tile_s, eps):
    N, C, H, W = x_nchw.shape
    Cout = w1.shape[0]
    HW = H * W

    # Fold conv2 bias + BatchNorm (running stats) into the second conv.
    bn_scale = gamma * jax.lax.rsqrt(running_var.astype(jnp.float32) + eps)
    w2f = (w2.astype(jnp.float32) * bn_scale[:, None])                 # (Cout, Cout)
    shift = ((b2 - running_mean).astype(jnp.float32) * bn_scale
             + beta.astype(jnp.float32)).reshape(Cout, 1)              # (Cout, 1)
    w1f = w1.astype(jnp.float32)
    b1f = b1.astype(jnp.float32).reshape(Cout, 1)

    # Channels-first layout straight from NCHW: no transposes needed.
    x_rows = x_nchw.reshape(N, C, HW)
    hw_pad = pl.cdiv(HW, tile_s) * tile_s
    if hw_pad != HW:
        # Only pads when H*W is not already a multiple of the lane tile.
        x_rows = jnp.pad(x_rows, ((0, 0), (0, 0), (0, hw_pad - HW)))

    out = pl.pallas_call(
        _sam0_kernel,
        out_shape=jax.ShapeDtypeStruct((N, Cout, hw_pad), x_nchw.dtype),
        grid_spec=pltpu.PrefetchScalarGridSpec(
            num_scalar_prefetch=0,
            grid=(N, hw_pad // tile_s),
            in_specs=[
                pl.BlockSpec((1, C, tile_s), lambda n, s: (n, 0, s)),   # x
                pl.BlockSpec((Cout, C), lambda n, s: (0, 0)),           # W1
                pl.BlockSpec((Cout, 1), lambda n, s: (0, 0)),           # b1
                pl.BlockSpec((Cout, Cout), lambda n, s: (0, 0)),        # W2'
                pl.BlockSpec((Cout, 1), lambda n, s: (0, 0)),           # shift'
            ],
            out_specs=pl.BlockSpec((1, Cout, tile_s), lambda n, s: (n, 0, s)),
        ),
        compiler_params=pltpu.CompilerParams(
            dimension_semantics=("parallel", "parallel")),
    )(x_rows, w1f, b1f, w2f, shift)

    if hw_pad != HW:
        out = out[:, :, :HW]
    return out.reshape(N, Cout, H, W)


def sam0_forward(x_nchw, w1, b1, w2, b2, gamma, beta, running_mean, running_var,
                 eps=1e-5, max_tile=8192, vmem_budget_bytes=24 << 20):
    """SAM0 forward (eval-mode BatchNorm).

    Weights follow the PyTorch layout with 1x1 spatial dims squeezed:
      w1, w2: (Cout, Cin);  b1, b2, gamma, beta, running_mean, running_var: (Cout,)
    """
    N, C, H, W = x_nchw.shape
    Cout = w1.shape[0]
    assert w1.shape == (Cout, C) and w2.shape == (Cout, Cout)
    # The residual t = x - x_reverse requires matching channel counts.
    assert Cout == C, "SAM0 requires in_channels == out_channels"

    # Lane tile: a multiple of 128 that divides the padded H*W and fits the
    # VMEM budget (double-buffered x & out blocks + fp32 working copies).
    HW = H * W
    hw_pad = ((HW + 127) // 128) * 128
    bytes_per_lane = 4 * (2 * C + 2 * Cout + 3 * Cout)   # x(dbl)+out(dbl)+temps
    cap = max(128, (vmem_budget_bytes // bytes_per_lane) // 128 * 128)
    tile_s = min(hw_pad, cap, (max_tile // 128) * 128)
    while hw_pad % tile_s != 0:
        tile_s -= 128

    return _sam0_impl(x_nchw, w1, b1, w2, b2, gamma, beta, running_mean,
                      running_var, tile_s=int(tile_s), eps=float(eps))


def _reference(x, w1, b1, w2, b2, gamma, beta, mean, var, eps=1e-5):
    # Pure-JAX reference with the module's exact math (eval-mode BN).
    def conv1x1(inp, w, b):
        return jnp.einsum("oc,nchw->nohw", w, inp) + b[None, :, None, None]

    x_origin = conv1x1(x, w1, b1)
    mask = 1.0 - jax.nn.sigmoid(x_origin)
    t = x - x_origin * mask
    y = conv1x1(t, w2, b2)
    y = (y - mean[None, :, None, None]) / jnp.sqrt(var[None, :, None, None] + eps)
    y = y * gamma[None, :, None, None] + beta[None, :, None, None]
    return jnp.maximum(y, 0.0)


if __name__ == "__main__":
    key = jax.random.PRNGKey(0)
    in_channels = 4
    out_channels = 4   # module requires in==out for the (x - x_reverse) residual
    N, H, W = 2, 16, 16

    ks = jax.random.split(key, 9)
    x = jax.random.normal(ks[0], (N, in_channels, H, W), jnp.float32)

    # PyTorch-layout 1x1-conv weights (Cout, Cin) and biases (Cout,).
    w1 = jax.random.normal(ks[1], (out_channels, in_channels), jnp.float32) * 0.1
    b1 = jax.random.normal(ks[2], (out_channels,), jnp.float32) * 0.1
    w2 = jax.random.normal(ks[3], (out_channels, out_channels), jnp.float32) * 0.1
    b2 = jax.random.normal(ks[4], (out_channels,), jnp.float32) * 0.1

    # BatchNorm2d (eval mode) parameters.
    gamma = 1.0 + 0.1 * jax.random.normal(ks[5], (out_channels,), jnp.float32)
    beta = 0.1 * jax.random.normal(ks[6], (out_channels,), jnp.float32)
    running_mean = 0.1 * jax.random.normal(ks[7], (out_channels,), jnp.float32)
    running_var = 1.0 + 0.1 * jnp.abs(
        jax.random.normal(ks[8], (out_channels,), jnp.float32))
    eps = 1e-5

    # Main check: 128-divisible spatial extent (no padding path).
    out = sam0_forward(x, w1, b1, w2, b2, gamma, beta,
                       running_mean, running_var, eps)
    out = jax.block_until_ready(out)
    ref = _reference(x, w1, b1, w2, b2, gamma, beta,
                     running_mean, running_var, eps)
    assert out.shape == (N, out_channels, H, W), out.shape
    assert jnp.allclose(out, ref, atol=1e-4, rtol=1e-4), float(
        jnp.max(jnp.abs(out - ref)))

    # Secondary check: non-128-multiple spatial extent exercises the padding path.
    x2 = jax.random.normal(jax.random.PRNGKey(1), (N, in_channels, 10, 10),
                           jnp.float32)
    out2 = jax.block_until_ready(
        sam0_forward(x2, w1, b1, w2, b2, gamma, beta,
                     running_mean, running_var, eps))
    ref2 = _reference(x2, w1, b1, w2, b2, gamma, beta,
                      running_mean, running_var, eps)
    assert jnp.allclose(out2, ref2, atol=1e-4, rtol=1e-4), float(
        jnp.max(jnp.abs(out2 - ref2)))

    print("KERNEL_OK")
</pallas_src>

<mosaic_0001>
module attributes {stable_mosaic.version = 11 : i64} {
  func.func @_sam0_kernel(%arg0: i32, %arg1: i32, %arg2: memref<1x4x256xf32, #tpu.memory_space<vmem>>, %arg3: memref<4x4xf32, #tpu.memory_space<vmem>>, %arg4: memref<4x1xf32, #tpu.memory_space<vmem>>, %arg5: memref<4x4xf32, #tpu.memory_space<vmem>>, %arg6: memref<4x1xf32, #tpu.memory_space<vmem>>, %arg7: memref<1x4x256xf32, #tpu.memory_space<vmem>>) attributes {dimension_semantics = [#tpu.dimension_semantics<parallel>, #tpu.dimension_semantics<parallel>], iteration_bounds = array<i64: 2, 1>, scalar_prefetch = 0 : i64, scratch_operands = 0 : i64, tpu.core_type = #tpu.core_type<tc>, window_params = [{transform_indices = @transform_0, window_bounds = array<i64: 1, 4, 256>}, {pipeline_mode = #tpu.pipeline_mode<synchronous>, transform_indices = @transform_1, window_bounds = array<i64: 4, 4>}, {pipeline_mode = #tpu.pipeline_mode<synchronous>, transform_indices = @transform_2, window_bounds = array<i64: 4, 1>}, {pipeline_mode = #tpu.pipeline_mode<synchronous>, transform_indices = @transform_3, window_bounds = array<i64: 4, 4>}, {pipeline_mode = #tpu.pipeline_mode<synchronous>, transform_indices = @transform_4, window_bounds = array<i64: 4, 1>}, {transform_indices = @transform_5, window_bounds = array<i64: 1, 4, 256>}]} {
    %c0 = arith.constant 0 : index
    %c0_0 = arith.constant 0 : index
    %c0_1 = arith.constant 0 : index
    %0 = vector.load %arg2[%c0, %c0_0, %c0_1] : memref<1x4x256xf32, #tpu.memory_space<vmem>>, vector<1x4x256xf32>
    %1 = vector.shape_cast %0 : vector<1x4x256xf32> to vector<4x256xf32>
    %c0_2 = arith.constant 0 : index
    %c0_3 = arith.constant 0 : index
    %2 = vector.load %arg3[%c0_2, %c0_3] : memref<4x4xf32, #tpu.memory_space<vmem>>, vector<4x4xf32>
    %cst = arith.constant dense<0.000000e+00> : vector<4x256xf32>
    %3 = tpu.matmul %2, %1, %cst {dimension_numbers = #tpu.dot_dimension_numbers<[1], [0], [0], [1], [0, 0, 1, 1], [], []>} : vector<4x4xf32>, vector<4x256xf32>, vector<4x256xf32> -> vector<4x256xf32>
    %c0_4 = arith.constant 0 : index
    %c0_5 = arith.constant 0 : index
    %4 = vector.load %arg4[%c0_4, %c0_5] : memref<4x1xf32, #tpu.memory_space<vmem>>, vector<4x1xf32>
    %5 = vector.broadcast %4 : vector<4x1xf32> to vector<4x256xf32>
    %6 = arith.addf %3, %5 : vector<4x256xf32>
    %7 = arith.negf %6 : vector<4x256xf32>
    %8 = math.exp %7 : vector<4x256xf32>
    %cst_6 = arith.constant 1.000000e+00 : f32
    %9 = vector.broadcast %cst_6 : f32 to vector<4x256xf32>
    %10 = arith.addf %9, %8 : vector<4x256xf32>
    %11 = arith.divf %9, %10 : vector<4x256xf32>
    %cst_7 = arith.constant 1.000000e+00 : f32
    %12 = vector.broadcast %cst_7 : f32 to vector<4x256xf32>
    %13 = arith.subf %12, %11 : vector<4x256xf32>
    %14 = arith.mulf %6, %13 : vector<4x256xf32>
    %15 = arith.subf %1, %14 : vector<4x256xf32>
    %c0_8 = arith.constant 0 : index
    %c0_9 = arith.constant 0 : index
    %16 = vector.load %arg5[%c0_8, %c0_9] : memref<4x4xf32, #tpu.memory_space<vmem>>, vector<4x4xf32>
    %cst_10 = arith.constant dense<0.000000e+00> : vector<4x256xf32>
    %17 = tpu.matmul %16, %15, %cst_10 {dimension_numbers = #tpu.dot_dimension_numbers<[1], [0], [0], [1], [0, 0, 1, 1], [], []>} : vector<4x4xf32>, vector<4x256xf32>, vector<4x256xf32> -> vector<4x256xf32>
    %c0_11 = arith.constant 0 : index
    %c0_12 = arith.constant 0 : index
    %18 = vector.load %arg6[%c0_11, %c0_12] : memref<4x1xf32, #tpu.memory_space<vmem>>, vector<4x1xf32>
    %19 = vector.broadcast %18 : vector<4x1xf32> to vector<4x256xf32>
    %20 = arith.addf %17, %19 : vector<4x256xf32>
    %cst_13 = arith.constant 0.000000e+00 : f32
    %21 = vector.broadcast %cst_13 : f32 to vector<4x256xf32>
    %22 = arith.maximumf %20, %21 : vector<4x256xf32>
    %c0_14 = arith.constant 0 : index
    %c0_15 = arith.constant 0 : index
    %c0_16 = arith.constant 0 : index
    %23 = vector.load %arg7[%c0_14, %c0_15, %c0_16] : memref<1x4x256xf32, #tpu.memory_space<vmem>>, vector<1x4x256xf32>
    %24 = vector.shape_cast %23 : vector<1x4x256xf32> to vector<4x256xf32>
    %25 = vector.shape_cast %22 : vector<4x256xf32> to vector<1x4x256xf32>
    tpu.vector_store %arg7[%c0_14, %c0_15, %c0_16], %25 {strides = array<i32>} : memref<1x4x256xf32, #tpu.memory_space<vmem>>, vector<1x4x256xf32>,
    return
  }
  func.func @transform_0(%arg0: i32, %arg1: i32) -> (i32, i32, i32) {
    %c0_i32 = arith.constant 0 : i32
    %c0_i32_0 = arith.constant 0 : i32
    return %arg0, %c0_i32, %arg1 : i32, i32, i32
  }
  func.func @transform_1(%arg0: i32, %arg1: i32) -> (i32, i32) {
    %c0_i32 = arith.constant 0 : i32
    %c0_i32_0 = arith.constant 0 : i32
    %c0_i32_1 = arith.constant 0 : i32
    return %c0_i32, %c0_i32_0 : i32, i32
  }
  func.func @transform_2(%arg0: i32, %arg1: i32) -> (i32, i32) {
    %c0_i32 = arith.constant 0 : i32
    %c0_i32_0 = arith.constant 0 : i32
    %c0_i32_1 = arith.constant 0 : i32
    return %c0_i32, %c0_i32_0 : i32, i32
  }
  func.func @transform_3(%arg0: i32, %arg1: i32) -> (i32, i32) {
    %c0_i32 = arith.constant 0 : i32
    %c0_i32_0 = arith.constant 0 : i32
    %c0_i32_1 = arith.constant 0 : i32
    return %c0_i32, %c0_i32_0 : i32, i32
  }
  func.func @transform_4(%arg0: i32, %arg1: i32) -> (i32, i32) {
    %c0_i32 = arith.constant 0 : i32
    %c0_i32_0 = arith.constant 0 : i32
    %c0_i32_1 = arith.constant 0 : i32
    return %c0_i32, %c0_i32_0 : i32, i32
  }
  func.func @transform_5(%arg0: i32, %arg1: i32) -> (i32, i32, i32) {
    %c0_i32 = arith.constant 0 : i32
    %c0_i32_0 = arith.constant 0 : i32
    return %arg0, %c0_i32, %arg1 : i32, i32, i32
  }
}

</mosaic_0001>

<bundles_post_ra>
// kernel: _sam0_impl.1
= control target key start
LH: loop header
LB: loop body
LE: loop exit
PB: predicated region body
PF: predicated region fallthrough
CT: control target
= control target key end

     0   :  { %s669_s18 = smov 0   ;;  %s671_s19 = smov 0   ;;  %s727_s0 = inlined_call_operand.vmem [shape: f32[2,4,256], index: 0, kind: input, shape index: {}]   ;;  %s728_s1 = inlined_call_operand.vmem [shape: f32[4,4], index: 1, kind: input, shape index: {}]   ;;  %s729_s2 = inlined_call_operand.vmem [shape: f32[4,1], index: 2, kind: input, shape index: {}]   ;;  %s730_s3 = inlined_call_operand.vmem [shape: f32[4,4], index: 3, kind: input, shape index: {}]   ;;  %s731_s4 = inlined_call_operand.vmem [shape: f32[4,1], index: 4, kind: input, shape index: {}]   ;;  %s732_s5 = inlined_call_operand.vmem [shape: f32[2,4,256], index: 5, kind: output, shape index: {}]  }
   0x1   :  { %s673_s20 = smov 0  }
   0x2 LB: > { %s27_s21 = sadd.s32 1, %s631_s19  ;;  %p560_p0 = scmp.ge.s32.totalorder %s635_s20, 1  ;;  %s635_s20 = sphi %s673_s20, %s15_s20   ;;  %s631_s19 = sphi %s671_s19, %s734_s19   ;;  %s627_s18 = sphi %s669_s18, %s733_s18  }
   0x3   : > { %p29_p1 = scmp.ge.s32.totalorder %s27_s21, 2  ;;  %p208_p2 = scmp.lt.s32.totalorder %s635_s20, 3 }
   0x5   : > { %s736_s21 = smov (%p29_p1, %s27_s21), 0  ;;  %p209_p3 = pnand %p560_p0, %p208_p2 }
   0x6   : > { %p245_p4 = scmp.lt.s32.totalorder (!%p209_p3), %s627_s18, 1  ;;  %v637_v0 = vmov (!%p209_p3), 0.0   ;;  %v266_v1 = vld [vmem:[%s729_s2] sm:$0xf] (!%p209_p3)  ;;  %v638_v2 = vmov (!%p209_p3), 0   ;;  %vm278_vm0 = vcmask (!%p209_p3), 1043456  }
   0x7   : > { %212 = sbr.rel (%p209_p3) target bundleno = 495 (0x1ef), region = 40  ;;  %347 = vmatprep.mubr.f32.mxu0 (!%p209_p3), %v637_v0  ;;  %455 = vmatprep.mubr.f32.mxu1 (!%p209_p3), %v637_v0  ;;  %v376_v3 = vld [vmem:[%s731_s4] sm:$0xf] (!%p209_p3)  ;;  %vm274_vm1 = vcmask (!%p209_p3), 31744  }
   0x8   : > { %603 = vset.pattern.permute.xlu0 (!%p209_p3), %v638_v2  ;;  %v265_v6 = vld [vmem:[%s728_s1] sm:$0xf] (!%p209_p3) }
   0x9   : > { %269 = vperm.xlu0 (!%p209_p3), %603, %v266_v1   ;;  %v375_v27 = vld [vmem:[%s730_s3] sm:$0xf] (!%p209_p3) }
   0xd   : > { %379 = vperm.xlu0 (!%p209_p3), %603, %v376_v3  }
   0xe   : > { %s738_s18 = smov (!%p245_p4, %s627_s18), 1 }
   0xf   : > { %s575_s24 = sshll.u32 %s738_s18, 3 }
  0x10   : > { %s252_s29 = scalar_lea.vmem %s727_s0, %s575_s24  ;;  %s262_s11 = scalar_lea.vmem %s732_s5, %s575_s24 }
  0x11   : > { %v264_v4 = vld [vmem:[%s252_s29] sm:$0xff] }
  0x12   : > { %v273_v5 = vcombine.high %v264_v4, %v264_v4 }
  0x14   : > { %565 = vmatprep.subr.msk.mxu0 %vm278_vm0, %v273_v5 }
  0x15   : > { %566 = vmatpush1.msk.msra.mxu0 %vm278_vm0, %v264_v4 }
  0x16   : > { %567 = vmatmul.mubr.msk.f32.vlgmr.msra.gmra.mrb[0].mxu0 %vm274_vm1, %v265_v6 }
  0x88   : > { %v270_v7 = vpop.permute.xlu0 %269 }
  0x8c   : > { %v380_v28 = vpop.permute.xlu0 %379 }
  0xe9   : > { %v349_v8 = vpop.f32.mrb[0].mxu0 }
  0xea   : > { %v350_v9 = vadd.f32 %v349_v8, %v270_v7  ;;  %v351_v10 = vpop.f32.mrb[1].mxu0 }
  0xeb   : > { %v352_v11 = vadd.f32 %v351_v10, %v270_v7 }
  0xec   : > { %v568_v12 = vmul.f32 -1.442695, %v350_v9 }
  0xed   : > { %v569_v13 = vmul.f32 -1.442695, %v352_v11 }
  0xee   : > { %605 = vpow2.f32 %v568_v12 }
  0xef   : > { %607 = vpow2.f32 %v569_v13 }
  0xf8   : > { %v606_v14 = vpop.eup %605 }
  0xf9   : > { %v608_v15 = vpop.eup %607  ;;  %v360_v16 = vadd.f32 1.0, %v606_v14 }
  0xfa   : > { %v361_v17 = vadd.f32 1.0, %v608_v15 }
  0xfb   : > { %609 = vrcp.f32 %v360_v16 }
  0xfc   : > { %611 = vrcp.f32 %v361_v17 }
 0x105   : > { %v610_v18 = vpop.eup %609 }
 0x106   : > { %v612_v19 = vpop.eup %611  ;;  %v366_v20 = vsub.f32 1.0, %v610_v18 }
 0x107   : > { %v367_v21 = vsub.f32 1.0, %v612_v19 }
 0x108   : > { %v368_v22 = vmul.f32 %v366_v20, %v350_v9 }
 0x109   : > { %v369_v23 = vmul.f32 %v367_v21, %v352_v11 }
 0x10b   : > { %v372_v24 = vcombine.low %v368_v22, %v369_v23 }
 0x10d   : > { %v374_v25 = vsub.f32 %v264_v4, %v372_v24 }
 0x10f   : > { %v383_v26 = vcombine.high %v374_v25, %v374_v25 }
 0x111   : > { %570 = vmatprep.subr.msk.mxu1 %vm278_vm0, %v383_v26 }
 0x112   : > { %571 = vmatpush1.msk.msra.mxu1 %vm278_vm0, %v374_v25 }
 0x113   : > { %572 = vmatmul.mubr.msk.f32.vlgmr.msra.gmra.mrb[0].mxu1 %vm274_vm1, %v375_v27 }
 0x1e6   : > { %v457_v29 = vpop.f32.mrb[0].mxu1 }
 0x1e7   : > { %v458_v30 = vadd.f32 %v457_v29, %v380_v28  ;;  %v459_v31 = vpop.f32.mrb[1].mxu1 }
 0x1e8   : > { %v460_v32 = vadd.f32 %v459_v31, %v380_v28 }
 0x1e9   : > { %v462_v33 = vmax.f32 %v458_v30, 0.0 }
 0x1ea   : > { %v463_v34 = vmax.f32 %v460_v32, 0.0 }
 0x1ec   : > { %v466_v35 = vcombine.low %v462_v33, %v463_v34 }
 0x1ee   : > { %468 = vst [vmem:[%s262_s11] sm:$0xff] %v466_v35 }
 0x1ef PF: > { %s15_s20 = sadd.s32 1, %s635_s20   ;;  %s733_s18 = smov %s631_s19 }
 0x1f0   : > { %p12_p5 = scmp.ge.s32.totalorder %s15_s20, 4   ;;  %s734_s19 = smov %s736_s21 }
 0x1f2   :  { %14 = sbr.rel (!%p12_p5) target bundleno = 2 (0x2), region = 70 }

</bundles_post_ra>
